<compile_context>
chip_gen: v5e
topology: v5e:2x2
jax: 0.10.0
libtpu: 0.0.40
codegen_flags: <defaults>
</compile_context>

<pallas_src>
import functools

import numpy as np
import jax
import jax.numpy as jnp
from jax.experimental import pallas as pl
from jax.experimental.pallas import tpu as pltpu

_RADII_SCALE = float(2.0 / np.sqrt(np.float32(12.0)))
_LANE = 128
_SUB = 8


def _round_up(x, m):
    return (x + m - 1) // m * m


def _get_rays_kernel(idx_ref, pose_ref, focal_ref, rays_d_ref, radii_ref, *, H, W):
    # camera-to-world rotation + focal, read as SMEM scalars
    p00, p01, p02 = pose_ref[0, 0], pose_ref[0, 1], pose_ref[0, 2]
    p10, p11, p12 = pose_ref[1, 0], pose_ref[1, 1], pose_ref[1, 2]
    p20, p21, p22 = pose_ref[2, 0], pose_ref[2, 1], pose_ref[2, 2]
    inv_f = 1.0 / focal_ref[0, 0]          # traced scalar
    inv_w = 1.0 / W                        # python constant (W is static)
    half_w = 0.5 * W
    half_h = 0.5 * H

    # ---- decode packed ray index (r*W + c) -> (r, c) -------------------------
    idx = idx_ref[...]                                     # (bm, 128) int32
    idx_f = idx.astype(jnp.float32)
    r_est = jnp.floor((idx_f + 0.5) * inv_w).astype(jnp.int32)   # within +/-1
    c_est = idx - r_est * W
    r_i = jnp.where(c_est < 0, r_est - 1,
                    jnp.where(c_est >= W, r_est + 1, r_est))     # exact row
    c_i = idx - r_i * W                                          # exact col

    r = r_i.astype(jnp.float32)
    c = c_i.astype(jnp.float32)
    cif = c * inv_f                       # shared between rays_d & radii paths
    rif = r * inv_f

    def normalize3(v0, v1, v2):
        inv_m = jax.lax.rsqrt(v0 * v0 + v1 * v1 + v2 * v2)
        return v0 * inv_m, v1 * inv_m, v2 * inv_m

    # ---- per-ray world-space direction at pixel centers (coords + 0.5) ------
    # normalize(R @ normalize(v)) == normalize(R @ v): skip the first normalize.
    x = cif + (0.5 - half_w) * inv_f
    y = -rif + (half_h - 0.5) * inv_f
    d0, d1, d2 = normalize3(x * p00 + y * p01 - p02,
                            x * p10 + y * p11 - p12,
                            x * p20 + y * p21 - p22)
    rays_d_ref[0] = d0                    # dense (bm, 128) slab stores
    rays_d_ref[1] = d1
    rays_d_ref[2] = d2

    # ---- radii (pixel footprint), closed-form --------------------------------
    # torch builds dh[r] = |rd[r] - rd[r+1]| on the INTEGER pixel grid for
    # r in [0, H-2] and pads the last row with dh[-2] = dh[H-3]; so clamp
    # r == H-1 to r_eff = H-3 and evaluate the neighbour pair directly.
    rif_eff = jnp.where(r_i >= H - 1, (H - 3) * inv_f, rif)
    gx = cif - half_w * inv_f
    ya = -rif_eff + half_h * inv_f        # row r_eff
    yb = ya - inv_f                       # row r_eff + 1
    gx0 = gx * p00 - p02                  # shared between the two neighbours
    gx1 = gx * p10 - p12
    gx2 = gx * p20 - p22
    a0, a1, a2 = normalize3(gx0 + ya * p01, gx1 + ya * p11, gx2 + ya * p21)
    b0, b1, b2 = normalize3(gx0 + yb * p01, gx1 + yb * p11, gx2 + yb * p21)
    e0, e1, e2 = a0 - b0, a1 - b1, a2 - b2
    radii_ref[...] = jnp.sqrt(e0 * e0 + e1 * e1 + e2 * e2) * _RADII_SCALE


def get_rays(coords, pose, focal, *, high, width, num_rays):
    """Pallas equivalent of Get_Rays.forward.

    coords: (num_rays, 2) integer (row, col) pixel indices, assumed in-range.
    pose:   (3, 4) camera-to-world [R | t].   focal: scalar focal length.
    Returns (rays_o, rays_d, radii) with shapes (N, 3), (N, 3), (N, 1).
    """
    assert high >= 3, "radii last-row padding (dh[-2]) requires high >= 3"
    coords = jnp.asarray(coords).astype(jnp.int32)
    pose = jnp.asarray(pose, jnp.float32)
    focal_arr = jnp.asarray(focal, jnp.float32).reshape(1, 1)

    # --- layout: rays packed as r*W + c, shaped (rows, 128), sublane-dense ----
    nrows = _round_up(max(num_rays, 1), _LANE) // _LANE
    nrows = _round_up(nrows, _SUB)
    if nrows >= 2 * _SUB:
        # >= 2 blocks so the "parallel" grid axis can shard across v7x's 2 TCs;
        # cap the block at 512 rows (64K rays, ~1.3 MiB of block VMEM).
        bm = min(512, _round_up((nrows + 1) // 2, _SUB))
    else:
        bm = nrows
    nrows_pad = _round_up(nrows, bm)
    n_pad = nrows_pad * _LANE
    grid = (nrows_pad // bm,)

    # Pack + pad (padded lanes get index 0 -> pixel (0,0), always in-range).
    idx = coords[:, 0] * width + coords[:, 1]                     # (N,) int32
    idx_grid = jnp.zeros((n_pad,), jnp.int32).at[:num_rays].set(idx)
    idx_grid = idx_grid.reshape(nrows_pad, _LANE)

    kernel = functools.partial(_get_rays_kernel, H=high, W=width)
    rays_d_t, radii_t = pl.pallas_call(
        kernel,
        out_shape=(
            jax.ShapeDtypeStruct((3, nrows_pad, _LANE), jnp.float32),  # rays_d
            jax.ShapeDtypeStruct((nrows_pad, _LANE), jnp.float32),     # radii
        ),
        grid=grid,
        in_specs=[
            pl.BlockSpec((bm, _LANE), lambda i: (i, 0)),               # packed idx
            pl.BlockSpec(memory_space=pltpu.MemorySpace.SMEM),         # pose
            pl.BlockSpec(memory_space=pltpu.MemorySpace.SMEM),         # focal
        ],
        out_specs=(
            pl.BlockSpec((3, bm, _LANE), lambda i: (0, i, 0)),
            pl.BlockSpec((bm, _LANE), lambda i: (i, 0)),
        ),
        compiler_params=pltpu.CompilerParams(dimension_semantics=("parallel",)),
    )(idx_grid, pose, focal_arr)

    # rays_o is pose[:, 3] tiled; independent of coords -> done in the wrapper.
    rays_o = jnp.broadcast_to(pose[:, 3][None, :], (num_rays, 3))
    # Transpose back to the module's (N, 3)/(N, 1) contract.  If the consumer
    # can take (3, N) / (N,) layouts, these reshuffles can be dropped.
    rays_d = rays_d_t.reshape(3, n_pad)[:, :num_rays].T
    radii = radii_t.reshape(n_pad)[:num_rays][:, None]
    return rays_o, rays_d, radii


def _reference(coords, pose, focal, H, W):
    """Pure-numpy port of the PyTorch forward for verification."""
    coords = np.asarray(coords)
    pose = np.asarray(pose, np.float32)
    focal = float(focal)
    h_idx, w_idx = np.meshgrid(np.arange(H), np.arange(W), indexing="ij")
    xs = (w_idx - 0.5 * W) / focal
    ys = (h_idx - 0.5 * H) / (-focal)
    dirs = np.stack([xs, ys, -np.ones_like(xs)], -1).astype(np.float32)
    dirs = dirs / np.linalg.norm(dirs, axis=-1, keepdims=True)
    rays_o = np.tile(pose[:, 3][None], (coords.shape[0], 1))
    rays_d = (dirs[..., None, :] * pose[None, None, :, :3]).sum(-1)
    rays_d = rays_d / np.linalg.norm(rays_d, axis=-1, keepdims=True)
    dh = np.linalg.norm(rays_d[:-1] - rays_d[1:], axis=-1)
    dh = np.concatenate([dh, dh[-2:-1]], 0)          # torch pads with dh[H-3]
    radii_grid = dh * (2.0 / np.sqrt(12.0))
    indic = coords[:, 1] + coords[:, 0] * W
    radii = radii_grid.reshape(-1)[indic][:, None]
    c = coords.astype(np.float32) + 0.5
    xs = (c[:, 1] - 0.5 * W) / focal
    ys = (c[:, 0] - 0.5 * H) / (-focal)
    d = np.stack([xs, ys, -np.ones_like(xs)], -1)
    d = d / np.linalg.norm(d, axis=-1, keepdims=True)
    rd = (d[:, None, :] * pose[None, :, :3]).sum(-1)
    rd = rd / np.linalg.norm(rd, axis=-1, keepdims=True)
    return rays_o.astype(np.float32), rd.astype(np.float32), radii.astype(np.float32)


if __name__ == "__main__":
    HIGH, WIDTH, NUM_RAYS = 16, 16, 8
    key = jax.random.PRNGKey(0)
    k1, k2, k3 = jax.random.split(key, 3)
    coords = jnp.stack(
        [jax.random.randint(k1, (NUM_RAYS,), 0, HIGH),
         jax.random.randint(k2, (NUM_RAYS,), 0, WIDTH)], axis=-1).astype(jnp.int32)
    # Exercise the image edges, including the special last row (r = H-1).
    coords = coords.at[0].set(jnp.array([HIGH - 1, WIDTH - 1], jnp.int32))
    coords = coords.at[1].set(jnp.array([0, 0], jnp.int32))
    coords = coords.at[2].set(jnp.array([HIGH - 2, 3], jnp.int32))
    pose = jax.random.normal(k3, (3, 4), jnp.float32)
    focal = 20.0

    rays_o, rays_d, radii = get_rays(coords, pose, focal,
                                     high=HIGH, width=WIDTH, num_rays=NUM_RAYS)
    jax.block_until_ready((rays_o, rays_d, radii))

    ro_ref, rd_ref, radii_ref = _reference(np.asarray(coords), pose, focal, HIGH, WIDTH)
    assert np.allclose(np.asarray(rays_o), ro_ref, atol=1e-5, rtol=1e-5)
    assert np.allclose(np.asarray(rays_d), rd_ref, atol=1e-5, rtol=1e-5)
    assert np.allclose(np.asarray(radii), radii_ref, atol=1e-5, rtol=1e-5)
    print("KERNEL_OK")
</pallas_src>

<mosaic_0001>
module attributes {stable_mosaic.version = 11 : i64} {
  func.func @_get_rays_kernel(%arg0: i32, %arg1: memref<8x128xi32, #tpu.memory_space<vmem>>, %arg2: memref<3x4xf32, #tpu.memory_space<smem>>, %arg3: memref<1x1xf32, #tpu.memory_space<smem>>, %arg4: memref<3x8x128xf32, #tpu.memory_space<vmem>>, %arg5: memref<8x128xf32, #tpu.memory_space<vmem>>) attributes {dimension_semantics = [#tpu.dimension_semantics<parallel>], iteration_bounds = array<i64: 1>, scalar_prefetch = 0 : i64, scratch_operands = 0 : i64, tpu.core_type = #tpu.core_type<tc>, window_params = [{transform_indices = @transform_0, window_bounds = array<i64: 8, 128>}, {transform_indices = @transform_1, window_bounds = array<i64: 3, 4>}, {transform_indices = @transform_2, window_bounds = array<i64: 1, 1>}, {transform_indices = @transform_3, window_bounds = array<i64: 3, 8, 128>}, {transform_indices = @transform_4, window_bounds = array<i64: 8, 128>}]} {
    %c0 = arith.constant 0 : index
    %c0_0 = arith.constant 0 : index
    %0 = memref.load %arg2[%c0, %c0_0] : memref<3x4xf32, #tpu.memory_space<smem>>
    %c0_1 = arith.constant 0 : index
    %c1 = arith.constant 1 : index
    %1 = memref.load %arg2[%c0_1, %c1] : memref<3x4xf32, #tpu.memory_space<smem>>
    %c0_2 = arith.constant 0 : index
    %c2 = arith.constant 2 : index
    %2 = memref.load %arg2[%c0_2, %c2] : memref<3x4xf32, #tpu.memory_space<smem>>
    %c1_3 = arith.constant 1 : index
    %c0_4 = arith.constant 0 : index
    %3 = memref.load %arg2[%c1_3, %c0_4] : memref<3x4xf32, #tpu.memory_space<smem>>
    %c1_5 = arith.constant 1 : index
    %c1_6 = arith.constant 1 : index
    %4 = memref.load %arg2[%c1_5, %c1_6] : memref<3x4xf32, #tpu.memory_space<smem>>
    %c1_7 = arith.constant 1 : index
    %c2_8 = arith.constant 2 : index
    %5 = memref.load %arg2[%c1_7, %c2_8] : memref<3x4xf32, #tpu.memory_space<smem>>
    %c2_9 = arith.constant 2 : index
    %c0_10 = arith.constant 0 : index
    %6 = memref.load %arg2[%c2_9, %c0_10] : memref<3x4xf32, #tpu.memory_space<smem>>
    %c2_11 = arith.constant 2 : index
    %c1_12 = arith.constant 1 : index
    %7 = memref.load %arg2[%c2_11, %c1_12] : memref<3x4xf32, #tpu.memory_space<smem>>
    %c2_13 = arith.constant 2 : index
    %c2_14 = arith.constant 2 : index
    %8 = memref.load %arg2[%c2_13, %c2_14] : memref<3x4xf32, #tpu.memory_space<smem>>
    %c0_15 = arith.constant 0 : index
    %c0_16 = arith.constant 0 : index
    %9 = memref.load %arg3[%c0_15, %c0_16] : memref<1x1xf32, #tpu.memory_space<smem>>
    %cst = arith.constant 1.000000e+00 : f32
    %10 = arith.divf %cst, %9 : f32
    %c0_17 = arith.constant 0 : index
    %c0_18 = arith.constant 0 : index
    %11 = vector.load %arg1[%c0_17, %c0_18] : memref<8x128xi32, #tpu.memory_space<vmem>>, vector<8x128xi32>
    %12 = arith.sitofp %11 : vector<8x128xi32> to vector<8x128xf32>
    %cst_19 = arith.constant 5.000000e-01 : f32
    %13 = vector.broadcast %cst_19 : f32 to vector<8x128xf32>
    %14 = arith.addf %12, %13 : vector<8x128xf32>
    %cst_20 = arith.constant 6.250000e-02 : f32
    %15 = vector.broadcast %cst_20 : f32 to vector<8x128xf32>
    %16 = arith.mulf %14, %15 : vector<8x128xf32>
    %17 = math.floor %16 : vector<8x128xf32>
    %18 = arith.fptosi %17 : vector<8x128xf32> to vector<8x128xi32>
    %c16_i32 = arith.constant 16 : i32
    %19 = vector.broadcast %c16_i32 : i32 to vector<8x128xi32>
    %20 = arith.muli %18, %19 : vector<8x128xi32>
    %21 = arith.subi %11, %20 : vector<8x128xi32>
    %c0_i32 = arith.constant 0 : i32
    %22 = vector.broadcast %c0_i32 : i32 to vector<8x128xi32>
    %23 = arith.cmpi slt, %21, %22 : vector<8x128xi32>
    %c1_i32 = arith.constant 1 : i32
    %24 = vector.broadcast %c1_i32 : i32 to vector<8x128xi32>
    %25 = arith.subi %18, %24 : vector<8x128xi32>
    %c16_i32_21 = arith.constant 16 : i32
    %26 = vector.broadcast %c16_i32_21 : i32 to vector<8x128xi32>
    %27 = arith.cmpi sge, %21, %26 : vector<8x128xi32>
    %c1_i32_22 = arith.constant 1 : i32
    %28 = vector.broadcast %c1_i32_22 : i32 to vector<8x128xi32>
    %29 = arith.addi %18, %28 : vector<8x128xi32>
    %30 = arith.select %27, %29, %18 : vector<8x128xi1>, vector<8x128xi32>
    %31 = arith.select %23, %25, %30 : vector<8x128xi1>, vector<8x128xi32>
    %c16_i32_23 = arith.constant 16 : i32
    %32 = vector.broadcast %c16_i32_23 : i32 to vector<8x128xi32>
    %33 = arith.muli %31, %32 : vector<8x128xi32>
    %34 = arith.subi %11, %33 : vector<8x128xi32>
    %35 = arith.sitofp %31 : vector<8x128xi32> to vector<8x128xf32>
    %36 = arith.sitofp %34 : vector<8x128xi32> to vector<8x128xf32>
    %37 = vector.broadcast %10 : f32 to vector<8x128xf32>
    %38 = arith.mulf %36, %37 : vector<8x128xf32>
    %39 = vector.broadcast %10 : f32 to vector<8x128xf32>
    %40 = arith.mulf %35, %39 : vector<8x128xf32>
    %cst_24 = arith.constant -7.500000e+00 : f32
    %41 = arith.mulf %cst_24, %10 : f32
    %42 = vector.broadcast %41 : f32 to vector<8x128xf32>
    %43 = arith.addf %38, %42 : vector<8x128xf32>
    %cst_25 = arith.constant 0.000000e+00 : f32
    %44 = vector.broadcast %cst_25 : f32 to vector<8x128xf32>
    %45 = arith.subf %44, %40 : vector<8x128xf32>
    %cst_26 = arith.constant 7.500000e+00 : f32
    %46 = arith.mulf %cst_26, %10 : f32
    %47 = vector.broadcast %46 : f32 to vector<8x128xf32>
    %48 = arith.addf %45, %47 : vector<8x128xf32>
    %49 = vector.broadcast %0 : f32 to vector<8x128xf32>
    %50 = arith.mulf %43, %49 : vector<8x128xf32>
    %51 = vector.broadcast %1 : f32 to vector<8x128xf32>
    %52 = arith.mulf %48, %51 : vector<8x128xf32>
    %53 = arith.addf %50, %52 : vector<8x128xf32>
    %54 = vector.broadcast %2 : f32 to vector<8x128xf32>
    %55 = arith.subf %53, %54 : vector<8x128xf32>
    %56 = vector.broadcast %3 : f32 to vector<8x128xf32>
    %57 = arith.mulf %43, %56 : vector<8x128xf32>
    %58 = vector.broadcast %4 : f32 to vector<8x128xf32>
    %59 = arith.mulf %48, %58 : vector<8x128xf32>
    %60 = arith.addf %57, %59 : vector<8x128xf32>
    %61 = vector.broadcast %5 : f32 to vector<8x128xf32>
    %62 = arith.subf %60, %61 : vector<8x128xf32>
    %63 = vector.broadcast %6 : f32 to vector<8x128xf32>
    %64 = arith.mulf %43, %63 : vector<8x128xf32>
    %65 = vector.broadcast %7 : f32 to vector<8x128xf32>
    %66 = arith.mulf %48, %65 : vector<8x128xf32>
    %67 = arith.addf %64, %66 : vector<8x128xf32>
    %68 = vector.broadcast %8 : f32 to vector<8x128xf32>
    %69 = arith.subf %67, %68 : vector<8x128xf32>
    %70 = arith.mulf %55, %55 : vector<8x128xf32>
    %71 = arith.mulf %62, %62 : vector<8x128xf32>
    %72 = arith.addf %70, %71 : vector<8x128xf32>
    %73 = arith.mulf %69, %69 : vector<8x128xf32>
    %74 = arith.addf %72, %73 : vector<8x128xf32>
    %75 = math.rsqrt %74 : vector<8x128xf32>
    %76 = arith.mulf %55, %75 : vector<8x128xf32>
    %77 = arith.mulf %62, %75 : vector<8x128xf32>
    %78 = arith.mulf %69, %75 : vector<8x128xf32>
    %c0_27 = arith.constant 0 : index
    %c0_28 = arith.constant 0 : index
    %c0_29 = arith.constant 0 : index
    %79 = vector.load %arg4[%c0_27, %c0_28, %c0_29] : memref<3x8x128xf32, #tpu.memory_space<vmem>>, vector<1x8x128xf32>
    %80 = vector.shape_cast %79 : vector<1x8x128xf32> to vector<8x128xf32>
    %81 = vector.shape_cast %76 : vector<8x128xf32> to vector<1x8x128xf32>
    tpu.vector_store %arg4[%c0_27, %c0_28, %c0_29], %81 {strides = array<i32>} : memref<3x8x128xf32, #tpu.memory_space<vmem>>, vector<1x8x128xf32>,
    %c1_30 = arith.constant 1 : index
    %c0_31 = arith.constant 0 : index
    %c0_32 = arith.constant 0 : index
    %82 = vector.load %arg4[%c1_30, %c0_31, %c0_32] : memref<3x8x128xf32, #tpu.memory_space<vmem>>, vector<1x8x128xf32>
    %83 = vector.shape_cast %82 : vector<1x8x128xf32> to vector<8x128xf32>
    %84 = vector.shape_cast %77 : vector<8x128xf32> to vector<1x8x128xf32>
    tpu.vector_store %arg4[%c1_30, %c0_31, %c0_32], %84 {strides = array<i32>} : memref<3x8x128xf32, #tpu.memory_space<vmem>>, vector<1x8x128xf32>,
    %c2_33 = arith.constant 2 : index
    %c0_34 = arith.constant 0 : index
    %c0_35 = arith.constant 0 : index
    %85 = vector.load %arg4[%c2_33, %c0_34, %c0_35] : memref<3x8x128xf32, #tpu.memory_space<vmem>>, vector<1x8x128xf32>
    %86 = vector.shape_cast %85 : vector<1x8x128xf32> to vector<8x128xf32>
    %87 = vector.shape_cast %78 : vector<8x128xf32> to vector<1x8x128xf32>
    tpu.vector_store %arg4[%c2_33, %c0_34, %c0_35], %87 {strides = array<i32>} : memref<3x8x128xf32, #tpu.memory_space<vmem>>, vector<1x8x128xf32>,
    %c15_i32 = arith.constant 15 : i32
    %88 = vector.broadcast %c15_i32 : i32 to vector<8x128xi32>
    %89 = arith.cmpi sge, %31, %88 : vector<8x128xi32>
    %cst_36 = arith.constant 1.300000e+01 : f32
    %90 = arith.mulf %cst_36, %10 : f32
    %91 = vector.broadcast %90 : f32 to vector<8x128xf32>
    %92 = arith.select %89, %91, %40 : vector<8x128xi1>, vector<8x128xf32>
    %cst_37 = arith.constant 8.000000e+00 : f32
    %93 = arith.mulf %cst_37, %10 : f32
    %94 = vector.broadcast %93 : f32 to vector<8x128xf32>
    %95 = arith.subf %38, %94 : vector<8x128xf32>
    %cst_38 = arith.constant 0.000000e+00 : f32
    %96 = vector.broadcast %cst_38 : f32 to vector<8x128xf32>
    %97 = arith.subf %96, %92 : vector<8x128xf32>
    %cst_39 = arith.constant 8.000000e+00 : f32
    %98 = arith.mulf %cst_39, %10 : f32
    %99 = vector.broadcast %98 : f32 to vector<8x128xf32>
    %100 = arith.addf %97, %99 : vector<8x128xf32>
    %101 = vector.broadcast %10 : f32 to vector<8x128xf32>
    %102 = arith.subf %100, %101 : vector<8x128xf32>
    %103 = vector.broadcast %0 : f32 to vector<8x128xf32>
    %104 = arith.mulf %95, %103 : vector<8x128xf32>
    %105 = vector.broadcast %2 : f32 to vector<8x128xf32>
    %106 = arith.subf %104, %105 : vector<8x128xf32>
    %107 = vector.broadcast %3 : f32 to vector<8x128xf32>
    %108 = arith.mulf %95, %107 : vector<8x128xf32>
    %109 = vector.broadcast %5 : f32 to vector<8x128xf32>
    %110 = arith.subf %108, %109 : vector<8x128xf32>
    %111 = vector.broadcast %6 : f32 to vector<8x128xf32>
    %112 = arith.mulf %95, %111 : vector<8x128xf32>
    %113 = vector.broadcast %8 : f32 to vector<8x128xf32>
    %114 = arith.subf %112, %113 : vector<8x128xf32>
    %115 = vector.broadcast %1 : f32 to vector<8x128xf32>
    %116 = arith.mulf %100, %115 : vector<8x128xf32>
    %117 = arith.addf %106, %116 : vector<8x128xf32>
    %118 = vector.broadcast %4 : f32 to vector<8x128xf32>
    %119 = arith.mulf %100, %118 : vector<8x128xf32>
    %120 = arith.addf %110, %119 : vector<8x128xf32>
    %121 = vector.broadcast %7 : f32 to vector<8x128xf32>
    %122 = arith.mulf %100, %121 : vector<8x128xf32>
    %123 = arith.addf %114, %122 : vector<8x128xf32>
    %124 = arith.mulf %117, %117 : vector<8x128xf32>
    %125 = arith.mulf %120, %120 : vector<8x128xf32>
    %126 = arith.addf %124, %125 : vector<8x128xf32>
    %127 = arith.mulf %123, %123 : vector<8x128xf32>
    %128 = arith.addf %126, %127 : vector<8x128xf32>
    %129 = math.rsqrt %128 : vector<8x128xf32>
    %130 = arith.mulf %117, %129 : vector<8x128xf32>
    %131 = arith.mulf %120, %129 : vector<8x128xf32>
    %132 = arith.mulf %123, %129 : vector<8x128xf32>
    %133 = vector.broadcast %1 : f32 to vector<8x128xf32>
    %134 = arith.mulf %102, %133 : vector<8x128xf32>
    %135 = arith.addf %106, %134 : vector<8x128xf32>
    %136 = vector.broadcast %4 : f32 to vector<8x128xf32>
    %137 = arith.mulf %102, %136 : vector<8x128xf32>
    %138 = arith.addf %110, %137 : vector<8x128xf32>
    %139 = vector.broadcast %7 : f32 to vector<8x128xf32>
    %140 = arith.mulf %102, %139 : vector<8x128xf32>
    %141 = arith.addf %114, %140 : vector<8x128xf32>
    %142 = arith.mulf %135, %135 : vector<8x128xf32>
    %143 = arith.mulf %138, %138 : vector<8x128xf32>
    %144 = arith.addf %142, %143 : vector<8x128xf32>
    %145 = arith.mulf %141, %141 : vector<8x128xf32>
    %146 = arith.addf %144, %145 : vector<8x128xf32>
    %147 = math.rsqrt %146 : vector<8x128xf32>
    %148 = arith.mulf %135, %147 : vector<8x128xf32>
    %149 = arith.mulf %138, %147 : vector<8x128xf32>
    %150 = arith.mulf %141, %147 : vector<8x128xf32>
    %151 = arith.subf %130, %148 : vector<8x128xf32>
    %152 = arith.subf %131, %149 : vector<8x128xf32>
    %153 = arith.subf %132, %150 : vector<8x128xf32>
    %154 = arith.mulf %151, %151 : vector<8x128xf32>
    %155 = arith.mulf %152, %152 : vector<8x128xf32>
    %156 = arith.addf %154, %155 : vector<8x128xf32>
    %157 = arith.mulf %153, %153 : vector<8x128xf32>
    %158 = arith.addf %156, %157 : vector<8x128xf32>
    %159 = math.sqrt %158 : vector<8x128xf32>
    %cst_40 = arith.constant 0.577350259 : f32
    %160 = vector.broadcast %cst_40 : f32 to vector<8x128xf32>
    %161 = arith.mulf %159, %160 : vector<8x128xf32>
    %c0_41 = arith.constant 0 : index
    %c0_42 = arith.constant 0 : index
    %162 = vector.load %arg5[%c0_41, %c0_42] : memref<8x128xf32, #tpu.memory_space<vmem>>, vector<8x128xf32>
    tpu.vector_store %arg5[%c0_41, %c0_42], %161 {strides = array<i32>} : memref<8x128xf32, #tpu.memory_space<vmem>>, vector<8x128xf32>,
    return
  }
  func.func @transform_0(%arg0: i32) -> (i32, i32) {
    %c0_i32 = arith.constant 0 : i32
    %c0_i32_0 = arith.constant 0 : i32
    return %arg0, %c0_i32 : i32, i32
  }
  func.func @transform_1(%arg0: i32) -> (i32, i32) {
    %c0_i32 = arith.constant 0 : i32
    %c0_i32_0 = arith.constant 0 : i32
    %c0_i32_1 = arith.constant 0 : i32
    return %c0_i32, %c0_i32_0 : i32, i32
  }
  func.func @transform_2(%arg0: i32) -> (i32, i32) {
    %c0_i32 = arith.constant 0 : i32
    %c0_i32_0 = arith.constant 0 : i32
    %c0_i32_1 = arith.constant 0 : i32
    return %c0_i32, %c0_i32_0 : i32, i32
  }
  func.func @transform_3(%arg0: i32) -> (i32, i32, i32) {
    %c0_i32 = arith.constant 0 : i32
    %c0_i32_0 = arith.constant 0 : i32
    %c0_i32_1 = arith.constant 0 : i32
    return %c0_i32, %arg0, %c0_i32_0 : i32, i32, i32
  }
  func.func @transform_4(%arg0: i32) -> (i32, i32) {
    %c0_i32 = arith.constant 0 : i32
    %c0_i32_0 = arith.constant 0 : i32
    return %arg0, %c0_i32 : i32, i32
  }
}

</mosaic_0001>

<bundles_post_ra>
// kernel: tpu_custom_call.1
= control target key start
LH: loop header
LB: loop body
LE: loop exit
PB: predicated region body
PF: predicated region fallthrough
CT: control target
= control target key end

     0   :  { %11 = vsyncpa [#allocation4], 0  ;;  %s465_s0 = inlined_call_operand.hbm [shape: s32[8,128], index: 0, kind: input, shape index: {}]   ;;  %s466_s1 = inlined_call_operand.hbm [shape: f32[3,4], index: 1, kind: input, shape index: {}]   ;;  %s467_s2 = inlined_call_operand.<no memory space> [shape: f32[1,1], index: 2, kind: input, shape index: {}]   ;;  %s468_s3 = inlined_call_operand.hbm [shape: f32[3,8,128], index: 3, kind: output, shape index: {0}]   ;;  %s469_s4 = inlined_call_operand.hbm [shape: f32[8,128], index: 4, kind: output, shape index: {1}]  }
   0x1   :  { %12 = vsyncpa [#allocation6], 0 }
   0x2   :  { %13 = vsyncpa [#allocation5], 0 }
   0x3   :  { %14 = vsyncpa [#allocation10], 0  ;;  %s20_s17 = sshll.u32 %s465_s0, 4  ;;  %s387_s18 = smov [#allocation3]   ;;  %s21_s17 = int_to_ptr.hbm [resolvable:$true] %s20_s17 }
   0x4   :  { %s22_s19 = sshll.u32 %s387_s18, 4  ;;  %s31_s22 = sshll.u32 %s466_s1, 4  ;;  %s23_s19 = int_to_ptr.vmem [resolvable:$true] %s22_s19  ;;  %s32_s22 = int_to_ptr.hbm [resolvable:$true] %s31_s22 }
   0x5   :  { %25 = dma.hbm_to_vmem [thread:$0]  %s21_s17, 128, %s23_s19, [#allocation4]  }
   0x6   :  { %s388_s23 = smov [#allocation7]  }
   0x7   :  { %34 = dma.hbm_to_smem %s32_s22, 64, %s388_s23, [#allocation6]  }
   0x8   :  { %379 = dma.done.wait [#allocation4], 128  }
   0x9   :  { %380 = vsyncadd [#allocation4], 4294967168 }
   0xa   :  { %381 = dma.done.wait [#allocation6], 64  }
   0xb   :  { %382 = vsyncadd [#allocation6], 4294967232 }
   0xc   :  { %45 = sfence }
   0xd   :  { %v56_v0 = vstv %s467_s2  ;;  %v72_v11 = vld [vmem:[#allocation3] sm:$0xff]  ;;  %s427_s0 = sld [smem:[#allocation7]]  ;;  %s389_s11 = smov [#allocation8]  }
   0xe   :  { %285 = vrcp.f32 %v56_v0  ;;  %v68_v3 = vand.u32 2147483648, %v56_v0  ;;  %vm62_vm0 = vweird.f32 %v56_v0  ;;  %v66_v5 = vand.u32 2147483647, %v56_v0  ;;  %s266_s1 = sld [smem:[#allocation7 + $0x1]]  ;;  %s453_s12 = sshll.u32 %s389_s11, 4  ;;  %s235_s12 = int_to_ptr.vmem [resolvable:$true] %s453_s12 }
   0xf   :  { %v73_v12 = vcvt.s32.f32 %v72_v11  ;;  %s429_s2 = sld [smem:[#allocation7 + $0x80]]  ;;  %s236_s15 = sshll.u32 %s468_s3, 4  ;;  %s237_s15 = int_to_ptr.hbm [resolvable:$true] %s236_s15 }
  0x10   :  { %v69_v7 = vor.u32 1.1754944e-38, %v68_v3  ;;  %vm67_vm3 = vcmp.eq.f32.partialorder %v66_v5, 8.507059e+37  ;;  %s269_s26 = sld [smem:[#allocation7 + $0x81]]  ;;  %s390_s3 = smov 128  }
  0x11   :  { %v74_v13 = vadd.f32 0.5, %v73_v12  ;;  %s431_s27 = sld [smem:[#allocation7 + $0x100]]  ;;  %s391_s16 = smov 8  }
  0x12   :  { %s272_s28 = sld [smem:[#allocation7 + $0x101]]  ;;  %s392_s17 = smov [#allocation9]  }
  0x13   :  { %v75_v14 = vmul.f32 0.0625, %v74_v13  ;;  %s433_s29 = sld [smem:[#allocation7 + $0x2]]  ;;  %v100_v31 = vstv %s427_s0  ;;  %s248_s18 = sshll.u32 %s392_s17, 4  ;;  %s249_s18 = int_to_ptr.vmem [resolvable:$true] %s248_s18 }
  0x14   :  { %v286_v1 = vpop.eup %285  ;;  %s435_s30 = sld [smem:[#allocation7 + $0x82]]  ;;  %v102_v32 = vstv %s266_s1  ;;  %s250_s21 = sshll.u32 %s469_s4, 4  ;;  %s251_s21 = int_to_ptr.hbm [resolvable:$true] %s250_s21 }
  0x15   :  { %v58_v2 = vmul.f32 %v286_v1, %v56_v0  ;;  %vm63_vm1 = vweird.f32 %v286_v1  ;;  %v76_v15 = vfloor.f32 %v75_v14  ;;  %s437_s6 = sld [smem:[#allocation7 + $0x102]]  ;;  %v107_v35 = vstv %s429_s2 }
  0x16   :  { %vm64_vm2 = vmor %vm62_vm0, %vm63_vm1  ;;  %v109_v38 = vstv %s269_s26 }
  0x17   :  { %v59_v4 = vsub.f32 1.0, %v58_v2  ;;  %v278_v16 = vcvt.f32.s32 %v76_v15  ;;  %v114_v36 = vstv %s431_s27 }
  0x18   :  { %v116_v39 = vstv %s272_s28 }
  0x19   :  { %v60_v6 = vmul.f32 %v286_v1, %v59_v4  ;;  %v78_v17 = vmul.u32 16, %v278_v16  ;;  %v83_v19 = vadd.s32 1, %v278_v16  ;;  %v274_v20 = vadd.s32 4294967295, %v278_v16 }
  0x1a   :  { %v105_v51 = vstv %s433_s29  ;;  %v112_v52 = vstv %s435_s30 }
  0x1b   :  { %v61_v8 = vadd.f32 %v286_v1, %v60_v6  ;;  %v79_v18 = vsub.s32 %v72_v11, %v78_v17  ;;  %v119_v53 = vstv %s437_s6 }
  0x1d   :  { %v65_v9 = vsel %vm64_vm2, %v286_v1, %v61_v8  ;;  %vm82_vm4 = vcmp.ge.s32.totalorder %v79_v18, 16  ;;  %vm80_vm5 = vcmp.lt.s32.totalorder %v79_v18, 0 }
  0x1e   :  { %v70_v10 = vsel %vm67_vm3, %v69_v7, %v65_v9  ;;  %v84_v21 = vsel %vm82_vm4, %v83_v19, %v278_v16 }
  0x1f   :  { %275 = vpush %v70_v10  ;;  %v85_v22 = vsel %vm80_vm5, %v274_v20, %v84_v21 }
  0x20   :  { %v86_v23 = vmul.u32 16, %v85_v22  ;;  %v88_v25 = vcvt.s32.f32 %v85_v22  ;;  %vm144_vm6 = vcmp.ge.s32.totalorder %v85_v22, 15 }
  0x22   :  { %v87_v24 = vsub.s32 %v72_v11, %v86_v23 }
  0x24   :  { %v89_v26 = vcvt.s32.f32 %v87_v24 }
  0x50   :  { %s276_s5 = spop %275 }
  0x51   :  { %v90_v27 = vstv %s276_s5  ;;  %s93_s7 = smul.f32 -7.5, %s276_s5 }
  0x52   :  { %v91_v28 = vmul.f32 %v90_v27, %v89_v26  ;;  %v92_v29 = vmul.f32 %v90_v27, %v88_v25  ;;  %s97_s8 = smul.f32 7.5, %s276_s5 }
  0x53   :  { %v94_v30 = vstv %s93_s7  ;;  %s145_s9 = smul.f32 13.0, %s276_s5 }
  0x54   :  { %v95_v33 = vadd.f32 %v94_v30, %v91_v28  ;;  %v96_v34 = vsub.f32 0.0, %v92_v29  ;;  %s148_s10 = smul.f32 8.0, %s276_s5  ;;  %v98_v37 = vstv %s97_s8 }
  0x55   :  { %v146_v40 = vstv %s145_s9 }
  0x56   :  { %v99_v41 = vadd.f32 %v98_v37, %v96_v34  ;;  %v101_v42 = vmul.f32 %v100_v31, %v95_v33  ;;  %v108_v43 = vmul.f32 %v107_v35, %v95_v33  ;;  %v115_v44 = vmul.f32 %v114_v36, %v95_v33 }
  0x57   :  { %v147_v45 = vsel %vm144_vm6, %v146_v40, %v92_v29  ;;  %v149_v46 = vstv %s148_s10 }
  0x58   :  { %v103_v47 = vmul.f32 %v102_v32, %v99_v41  ;;  %v110_v48 = vmul.f32 %v109_v38, %v99_v41  ;;  %v117_v49 = vmul.f32 %v116_v39, %v99_v41  ;;  %v150_v50 = vsub.f32 %v91_v28, %v149_v46 }
  0x59   :  { %v151_v54 = vsub.f32 0.0, %v147_v45 }
  0x5a   :  { %v104_v55 = vadd.f32 %v103_v47, %v101_v42  ;;  %v111_v56 = vadd.f32 %v110_v48, %v108_v43  ;;  %v118_v57 = vadd.f32 %v117_v49, %v115_v44  ;;  %v154_v58 = vmul.f32 %v150_v50, %v100_v31 }
  0x5b   :  { %v152_v59 = vadd.f32 %v151_v54, %v149_v46  ;;  %v156_v60 = vmul.f32 %v150_v50, %v107_v35  ;;  %v158_v61 = vmul.f32 %v150_v50, %v114_v36 }
  0x5c   :  { %v155_v62 = vsub.f32 %v154_v58, %v105_v51  ;;  %v106_v63 = vsub.f32 %v104_v55, %v105_v51  ;;  %v113_v0 = vsub.f32 %v111_v56, %v112_v52  ;;  %v120_v1 = vsub.f32 %v118_v57, %v119_v53 }
  0x5d   :  { %v153_v2 = vsub.f32 %v152_v59, %v90_v27  ;;  %v157_v3 = vsub.f32 %v156_v60, %v112_v52  ;;  %v159_v4 = vsub.f32 %v158_v61, %v119_v53  ;;  %v160_v5 = vmul.f32 %v152_v59, %v102_v32 }
  0x5e   :  { %v162_v6 = vmul.f32 %v152_v59, %v109_v38  ;;  %v164_v7 = vmul.f32 %v152_v59, %v116_v39  ;;  %v121_v8 = vmul.f32 %v106_v63, %v106_v63  ;;  %v122_v9 = vmul.f32 %v113_v0, %v113_v0 }
  0x5f   :  { %v445_v10 = vadd.f32 %v160_v5, %v155_v62  ;;  %v184_v11 = vmul.f32 %v153_v2, %v102_v32  ;;  %v186_v12 = vmul.f32 %v153_v2, %v109_v38  ;;  %v188_v13 = vmul.f32 %v153_v2, %v116_v39 }
  0x60   :  { %v163_v14 = vadd.f32 %v162_v6, %v157_v3  ;;  %v447_v15 = vadd.f32 %v164_v7, %v159_v4  ;;  %v123_v16 = vadd.f32 %v122_v9, %v121_v8  ;;  %v124_v17 = vmul.f32 %v120_v1, %v120_v1 }
  0x61   :  { %v166_v18 = vmul.f32 %v445_v10, %v445_v10  ;;  %v185_v19 = vadd.f32 %v184_v11, %v155_v62  ;;  %v187_v20 = vadd.f32 %v186_v12, %v157_v3  ;;  %v189_v21 = vadd.f32 %v188_v13, %v159_v4 }
  0x62   :  { %v167_v22 = vmul.f32 %v163_v14, %v163_v14  ;;  %v125_v23 = vadd.f32 %v124_v17, %v123_v16  ;;  %v169_v27 = vmul.f32 %v447_v15, %v447_v15 }
  0x63   :  { %v190_v24 = vmul.f32 %v185_v19, %v185_v19  ;;  %v191_v25 = vmul.f32 %v187_v20, %v187_v20  ;;  %v193_v29 = vmul.f32 %v189_v21, %v189_v21 }
  0x64   :  { %v168_v26 = vadd.f32 %v167_v22, %v166_v18  ;;  %287 = vrsqrt.f32 %v125_v23  ;;  %vm132_vm8 = vweird.f32 %v125_v23 }
  0x65   :  { %v192_v28 = vadd.f32 %v191_v25, %v190_v24 }
  0x66   :  { %v170_v30 = vadd.f32 %v169_v27, %v168_v26 }
  0x67   :  { %v194_v31 = vadd.f32 %v193_v29, %v192_v28 }
  0x68   :  { %289 = vrsqrt.f32 %v170_v30  ;;  %vm177_vm12 = vweird.f32 %v170_v30 }
  0x69   :  { %291 = vrsqrt.f32 %v194_v31  ;;  %vm201_vm14 = vweird.f32 %v194_v31 }
  0x6a   :  { %v288_v32 = vpop.eup %287 }
  0x6b   :  { %v127_v33 = vmul.f32 %v288_v32, %v125_v23  ;;  %vm133_vm7 = vweird.f32 %v288_v32 }
  0x6c   :  { %vm134_vm9 = vmor %vm132_vm8, %vm133_vm7 }
  0x6d   :  { %v128_v34 = vmul.f32 %v288_v32, %v127_v33 }
  0x6e   :  { %v290_v35 = vpop.eup %289 }
  0x6f   :  { %v292_v36 = vpop.eup %291  ;;  %v172_v37 = vmul.f32 %v290_v35, %v170_v30  ;;  %v129_v38 = vmul.f32 0.5, %v128_v34  ;;  %vm178_vm10 = vweird.f32 %v290_v35 }
  0x70   :  { %v196_v39 = vmul.f32 %v292_v36, %v194_v31  ;;  %vm202_vm11 = vweird.f32 %v292_v36  ;;  %vm179_vm13 = vmor %vm177_vm12, %vm178_vm10 }
  0x71   :  { %v173_v40 = vmul.f32 %v290_v35, %v172_v37  ;;  %v130_v41 = vsub.f32 1.5, %v129_v38  ;;  %vm203_vm15 = vmor %vm201_vm14, %vm202_vm11 }
  0x72   :  { %v197_v42 = vmul.f32 %v292_v36, %v196_v39 }
  0x73   :  { %v174_v43 = vmul.f32 0.5, %v173_v40  ;;  %v131_v44 = vmul.f32 %v288_v32, %v130_v41 }
  0x74   :  { %v198_v45 = vmul.f32 0.5, %v197_v42 }
  0x75   :  { %v175_v46 = vsub.f32 1.5, %v174_v43  ;;  %v135_v47 = vsel %vm134_vm9, %v288_v32, %v131_v44 }
  0x76   :  { %v199_v48 = vsub.f32 1.5, %v198_v45  ;;  %v136_v49 = vmul.f32 %v135_v47, %v106_v63  ;;  %v137_v50 = vmul.f32 %v135_v47, %v113_v0  ;;  %v138_v51 = vmul.f32 %v135_v47, %v120_v1 }
  0x77   :  { %v176_v52 = vmul.f32 %v290_v35, %v175_v46 }
  0x78   :  { %v200_v53 = vmul.f32 %v292_v36, %v199_v48  ;;  %139 = vst [vmem:[#allocation8] sm:$0xff] %v136_v49 }
  0x79   :  { %v180_v54 = vsel %vm179_vm13, %v290_v35, %v176_v52  ;;  %141 = vst [vmem:[#allocation8 + $0x8] sm:$0xff] %v137_v50 }
  0x7a   :  { %v181_v55 = vmul.f32 %v180_v54, %v445_v10  ;;  %v182_v56 = vmul.f32 %v180_v54, %v163_v14  ;;  %v204_v57 = vsel %vm203_vm15, %v292_v36, %v200_v53  ;;  %143 = vst [vmem:[#allocation8 + $0x10] sm:$0xff] %v138_v51  ;;  %v183_v58 = vmul.f32 %v180_v54, %v447_v15 }
  0x7b   :  { %v205_v59 = vmul.f32 %v204_v57, %v185_v19  ;;  %v206_v60 = vmul.f32 %v204_v57, %v187_v20  ;;  %v207_v61 = vmul.f32 %v204_v57, %v189_v21  ;;  %242 = dma.vmem_to_hbm [thread:$0]  %s235_s12, 384, %s237_s15, [#allocation5], %s390_s3, %s390_s3, %s391_s16  }
  0x7d   :  { %v208_v62 = vsub.f32 %v181_v55, %v205_v59  ;;  %v209_v63 = vsub.f32 %v182_v56, %v206_v60  ;;  %v210_v0 = vsub.f32 %v183_v58, %v207_v61 }
  0x7f   :  { %v211_v1 = vmul.f32 %v208_v62, %v208_v62  ;;  %v212_v2 = vmul.f32 %v209_v63, %v209_v63  ;;  %v214_v4 = vmul.f32 %v210_v0, %v210_v0 }
  0x81   :  { %v213_v3 = vadd.f32 %v212_v2, %v211_v1 }
  0x83   :  { %v215_v5 = vadd.f32 %v214_v4, %v213_v3 }
  0x85   :  { %293 = vrsqrt.f32 %v215_v5  ;;  %vm223_vm0 = vcmp.eq.f32.partialorder %v215_v5, inf  ;;  %v226_v13 = vand.u32 2147483648, %v215_v5  ;;  %vm225_vm1 = vcmp.eq.f32.partialorder %v215_v5, 0.0 }
  0x8b   :  { %v294_v6 = vpop.eup %293 }
  0x8c   :  { %v217_v7 = vmul.f32 %v294_v6, %v215_v5 }
  0x8e   :  { %v218_v8 = vmul.f32 %v294_v6, %v217_v7 }
  0x90   :  { %v219_v9 = vmul.f32 0.5, %v218_v8 }
  0x92   :  { %v220_v10 = vsub.f32 1.5, %v219_v9 }
  0x94   :  { %v221_v11 = vmul.f32 %v294_v6, %v220_v10 }
  0x96   :  { %v222_v12 = vmul.f32 %v221_v11, %v215_v5 }
  0x98   :  { %v224_v14 = vsel %vm223_vm0, %v215_v5, %v222_v12 }
  0x99   :  { %v227_v15 = vsel %vm225_vm1, %v226_v13, %v224_v14 }
  0x9a   :  { %v228_v16 = vmul.f32 0.57735026, %v227_v15 }
  0x9c   :  { %229 = vst [vmem:[#allocation9] sm:$0xff] %v228_v16 }
  0x9d   :  { %253 = dma.vmem_to_hbm [thread:$0]  %s249_s18, 128, %s251_s21, [#allocation10]  }
  0x9e   :  { %383 = dma.done.wait [#allocation5], 384  }
  0x9f   :  { %384 = vsyncadd [#allocation5], 4294966912 }
  0xa0   :  { %385 = dma.done.wait [#allocation10], 128  }
  0xa1   :  { %386 = vsyncadd [#allocation10], 4294967168 }
  0xa2   :  { %262 = vsyncpa [#allocation4], 1 }
  0xa3   :  { %263 = vsyncpa [#allocation5], 1 }
  0xa4   :  { %264 = vsyncpa [#allocation10], 1 }
  0xa5   :  { %265 = vsyncpa [#allocation6], 1 }

</bundles_post_ra>
